<compile_context>
chip_gen: v5e
topology: v5e:2x2
jax: 0.10.0
libtpu: 0.0.40
codegen_flags: <defaults>
</compile_context>

<pallas_src>
import functools

import jax
import jax.numpy as jnp
from jax import lax
from jax.experimental import pallas as pl
from jax.experimental.pallas import tpu as pltpu


def _round_up(n, m):
    return ((n + m - 1) // m) * m


def vanilla_rnn_kernel(x_ref, whx_ref, whh_ref, b_ref, wph_ref, bp_ref,
                       out_ref, *, out_dim):
    # x_ref:   (seq, B_BLK, IN_P)   one batch tile, time-major
    # whx_ref: (IN_P, H_P)          Whx^T, zero-padded
    # whh_ref: (H_P, H_P)           Whh^T, zero-padded
    # b_ref:   (1, H_P)             Whh.bias + bh (folded), zero-padded
    # wph_ref: (H_P, OUT_P)         Wph^T, zero-padded
    # bp_ref:  (1, OUT_P)           Wph.bias, zero-padded
    # out_ref: (B_BLK, OUT_P)       softmax probabilities (padded lanes ~0)
    seq_len, b_blk, _ = x_ref.shape
    hid = whh_ref.shape[0]

    whx = whx_ref[...]
    whh = whh_ref[...]
    bias = jnp.broadcast_to(b_ref[...], (b_blk, hid))  # hoisted: one broadcast total

    # (1) Input projection for ALL timesteps, hoisted off the serial
    #     dependence chain (independent MXU matmuls + folded bias add).
    xw = [jnp.dot(x_ref[t], whx, preferred_element_type=jnp.float32) + bias
          for t in range(seq_len)]

    # (2) Serial recurrence: h carried as a value (stays in vregs), fully
    #     unrolled so each step is only  h @ Whh + xw[t] -> tanh.
    h = jnp.zeros((b_blk, hid), jnp.float32)
    for t in range(seq_len):
        h = jnp.tanh(xw[t] + jnp.dot(h, whh, preferred_element_type=jnp.float32))

    # (3) Output head + softmax over the real output columns only.
    o = jnp.dot(h, wph_ref[...], preferred_element_type=jnp.float32) + bp_ref[...]
    col = lax.broadcasted_iota(jnp.int32, o.shape, dimension=1)
    o = jnp.where(col < out_dim, o, -1e30)        # mask padded logit lanes
    m = jnp.max(o, axis=-1, keepdims=True)
    e = jnp.exp(o - m)
    denom = jnp.sum(e, axis=-1, keepdims=True)
    inv = pl.reciprocal(denom, approx=True)        # EUP seed
    inv = inv * (2.0 - denom * inv)                # one Newton step -> ~fp32 exact
    out_ref[...] = e * inv


def vanilla_rnn_forward(x, params):
    """x: (batch, seq, input_dim) float32. Returns softmax probs (batch, output_dim)."""
    whx_w, whh_w, whh_b, bh, wph_w, wph_b = params
    batch, seq, input_dim = x.shape
    hidden_dim = whx_w.shape[0]
    output_dim = wph_w.shape[0]

    # Hardware-tile padding: 8 sublanes for batch/input, 128 lanes for hidden/out.
    B_BLK = 8
    B_P = _round_up(batch, B_BLK)
    IN_P = _round_up(input_dim, 8)
    H_P = _round_up(hidden_dim, 128)
    OUT_P = _round_up(output_dim, 128)

    # Layout plumbing only (no compute hoisted into the wrapper):
    x_tm = jnp.transpose(x.astype(jnp.float32), (1, 0, 2))          # (seq, B, in)
    x_tm = jnp.pad(x_tm, ((0, 0), (0, B_P - batch), (0, IN_P - input_dim)))
    whx_T = jnp.pad(whx_w.T.astype(jnp.float32),
                    ((0, IN_P - input_dim), (0, H_P - hidden_dim)))
    whh_T = jnp.pad(whh_w.T.astype(jnp.float32),
                    ((0, H_P - hidden_dim), (0, H_P - hidden_dim)))
    wph_T = jnp.pad(wph_w.T.astype(jnp.float32),
                    ((0, H_P - hidden_dim), (0, OUT_P - output_dim)))
    b_row = jnp.pad((whh_b + bh).astype(jnp.float32).reshape(1, hidden_dim),
                    ((0, 0), (0, H_P - hidden_dim)))                 # folded bias
    bp_row = jnp.pad(wph_b.astype(jnp.float32).reshape(1, output_dim),
                     ((0, 0), (0, OUT_P - output_dim)))

    # Batch-parallel grid (8-row tiles); weights stay fully VMEM-resident.
    # NOTE: at large seq / hidden this would add a seq-streamed "arbitrary"
    # grid axis for x (v7x has only 64 MiB VMEM); unnecessary at these sizes.
    grid = (B_P // B_BLK,)
    kernel = functools.partial(vanilla_rnn_kernel, out_dim=output_dim)

    out_p = pl.pallas_call(
        kernel,
        out_shape=jax.ShapeDtypeStruct((B_P, OUT_P), jnp.float32),
        grid_spec=pltpu.PrefetchScalarGridSpec(
            num_scalar_prefetch=0,
            grid=grid,
            in_specs=[
                pl.BlockSpec((seq, B_BLK, IN_P), lambda b: (0, b, 0)),  # x tile
                pl.BlockSpec((IN_P, H_P), lambda b: (0, 0)),            # Whx^T
                pl.BlockSpec((H_P, H_P), lambda b: (0, 0)),             # Whh^T
                pl.BlockSpec((1, H_P), lambda b: (0, 0)),               # folded bias
                pl.BlockSpec((H_P, OUT_P), lambda b: (0, 0)),           # Wph^T
                pl.BlockSpec((1, OUT_P), lambda b: (0, 0)),             # Wph bias
            ],
            out_specs=pl.BlockSpec((B_BLK, OUT_P), lambda b: (b, 0)),
        ),
        compiler_params=pltpu.CompilerParams(
            dimension_semantics=("parallel",),
            vmem_limit_bytes=32 * 1024 * 1024,
        ),
    )(x_tm, whx_T, whh_T, b_row, wph_T, bp_row)

    return out_p[:batch, :output_dim]


def vanilla_rnn_reference(x, params):
    """Pure-JAX reference mirroring the PyTorch forward."""
    whx_w, whh_w, whh_b, bh, wph_w, wph_b = params
    batch = x.shape[0]
    hidden_dim = whx_w.shape[0]
    h = jnp.zeros((batch, hidden_dim), jnp.float32)
    for t in range(x.shape[1]):
        x_t = x[:, t, :]
        h = jnp.tanh(x_t @ whx_w.T + h @ whh_w.T + whh_b + bh)
    o = h @ wph_w.T + wph_b
    return jax.nn.softmax(o, axis=1)


def init_params(key, input_dim, hidden_dim, output_dim):
    """Deterministic init mimicking nn.Linear default (uniform +-1/sqrt(fan_in))."""
    ks = jax.random.split(key, 5)

    def u(k, shape, fan_in):
        bound = 1.0 / jnp.sqrt(fan_in)
        return jax.random.uniform(k, shape, jnp.float32, -bound, bound)

    whx_w = u(ks[0], (hidden_dim, input_dim), input_dim)     # Whx (no bias)
    whh_w = u(ks[1], (hidden_dim, hidden_dim), hidden_dim)   # Whh weight
    whh_b = u(ks[2], (hidden_dim,), hidden_dim)              # Whh bias
    bh = jnp.zeros((hidden_dim,), jnp.float32)               # extra bias param
    wph_w = u(ks[3], (output_dim, hidden_dim), hidden_dim)   # Wph weight
    wph_b = u(ks[4], (output_dim,), hidden_dim)              # Wph bias
    return (whx_w, whh_w, whh_b, bh, wph_w, wph_b)


if __name__ == "__main__":
    # Small shapes consistent with the module: seq=8, input_dim=4, hidden=32, out=10
    batch, seq, input_dim, hidden_dim, output_dim = 2, 8, 4, 32, 10

    root = jax.random.PRNGKey(0)
    kx, kp = jax.random.split(root)
    x = jax.random.normal(kx, (batch, seq, input_dim), jnp.float32)
    params = init_params(kp, input_dim, hidden_dim, output_dim)

    y = vanilla_rnn_forward(x, params)
    jax.block_until_ready(y)

    y_ref = vanilla_rnn_reference(x, params)
    assert y.shape == (batch, output_dim)
    # Tolerance sized for the EUP approximate reciprocal (+1 Newton step) and
    # default-precision MXU matmuls; comfortably tight for softmax probs.
    assert jnp.allclose(y, y_ref, atol=1e-4, rtol=1e-4), "mismatch vs reference"
    assert jnp.allclose(jnp.sum(y, axis=1), jnp.ones((batch,)), atol=1e-4)

    print("KERNEL_OK")
</pallas_src>

<mosaic_0001>
module attributes {stable_mosaic.version = 11 : i64} {
  func.func @vanilla_rnn_kernel(%arg0: i32, %arg1: memref<8x8x8xf32, #tpu.memory_space<vmem>>, %arg2: memref<8x128xf32, #tpu.memory_space<vmem>>, %arg3: memref<128x128xf32, #tpu.memory_space<vmem>>, %arg4: memref<1x128xf32, #tpu.memory_space<vmem>>, %arg5: memref<128x128xf32, #tpu.memory_space<vmem>>, %arg6: memref<1x128xf32, #tpu.memory_space<vmem>>, %arg7: memref<8x128xf32, #tpu.memory_space<vmem>>) attributes {dimension_semantics = [#tpu.dimension_semantics<parallel>], iteration_bounds = array<i64: 1>, scalar_prefetch = 0 : i64, scratch_operands = 0 : i64, tpu.core_type = #tpu.core_type<tc>, window_params = [{transform_indices = @transform_0, window_bounds = array<i64: 8, 8, 8>}, {pipeline_mode = #tpu.pipeline_mode<synchronous>, transform_indices = @transform_1, window_bounds = array<i64: 8, 128>}, {pipeline_mode = #tpu.pipeline_mode<synchronous>, transform_indices = @transform_2, window_bounds = array<i64: 128, 128>}, {pipeline_mode = #tpu.pipeline_mode<synchronous>, transform_indices = @transform_3, window_bounds = array<i64: 1, 128>}, {pipeline_mode = #tpu.pipeline_mode<synchronous>, transform_indices = @transform_4, window_bounds = array<i64: 128, 128>}, {pipeline_mode = #tpu.pipeline_mode<synchronous>, transform_indices = @transform_5, window_bounds = array<i64: 1, 128>}, {transform_indices = @transform_6, window_bounds = array<i64: 8, 128>}]} {
    %c0 = arith.constant 0 : index
    %c0_0 = arith.constant 0 : index
    %0 = vector.load %arg2[%c0, %c0_0] : memref<8x128xf32, #tpu.memory_space<vmem>>, vector<8x128xf32>
    %c0_1 = arith.constant 0 : index
    %c0_2 = arith.constant 0 : index
    %1 = vector.load %arg3[%c0_1, %c0_2] : memref<128x128xf32, #tpu.memory_space<vmem>>, vector<128x128xf32>
    %c0_3 = arith.constant 0 : index
    %c0_4 = arith.constant 0 : index
    %2 = vector.load %arg4[%c0_3, %c0_4] : memref<1x128xf32, #tpu.memory_space<vmem>>, vector<1x128xf32>
    %3 = vector.shape_cast %2 : vector<1x128xf32> to vector<1x128xf32>
    %4 = vector.broadcast %3 : vector<1x128xf32> to vector<8x128xf32>
    %c0_5 = arith.constant 0 : index
    %c0_6 = arith.constant 0 : index
    %c0_7 = arith.constant 0 : index
    %5 = vector.load %arg1[%c0_5, %c0_6, %c0_7] : memref<8x8x8xf32, #tpu.memory_space<vmem>>, vector<1x8x8xf32>
    %6 = vector.shape_cast %5 : vector<1x8x8xf32> to vector<8x8xf32>
    %cst = arith.constant dense<0.000000e+00> : vector<8x128xf32>
    %7 = tpu.matmul %6, %0, %cst {dimension_numbers = #tpu.dot_dimension_numbers<[1], [0], [0], [1], [0, 0, 1, 1], [], []>} : vector<8x8xf32>, vector<8x128xf32>, vector<8x128xf32> -> vector<8x128xf32>
    %8 = arith.addf %7, %4 : vector<8x128xf32>
    %c1 = arith.constant 1 : index
    %c0_8 = arith.constant 0 : index
    %c0_9 = arith.constant 0 : index
    %9 = vector.load %arg1[%c1, %c0_8, %c0_9] : memref<8x8x8xf32, #tpu.memory_space<vmem>>, vector<1x8x8xf32>
    %10 = vector.shape_cast %9 : vector<1x8x8xf32> to vector<8x8xf32>
    %cst_10 = arith.constant dense<0.000000e+00> : vector<8x128xf32>
    %11 = tpu.matmul %10, %0, %cst_10 {dimension_numbers = #tpu.dot_dimension_numbers<[1], [0], [0], [1], [0, 0, 1, 1], [], []>} : vector<8x8xf32>, vector<8x128xf32>, vector<8x128xf32> -> vector<8x128xf32>
    %12 = arith.addf %11, %4 : vector<8x128xf32>
    %c2 = arith.constant 2 : index
    %c0_11 = arith.constant 0 : index
    %c0_12 = arith.constant 0 : index
    %13 = vector.load %arg1[%c2, %c0_11, %c0_12] : memref<8x8x8xf32, #tpu.memory_space<vmem>>, vector<1x8x8xf32>
    %14 = vector.shape_cast %13 : vector<1x8x8xf32> to vector<8x8xf32>
    %cst_13 = arith.constant dense<0.000000e+00> : vector<8x128xf32>
    %15 = tpu.matmul %14, %0, %cst_13 {dimension_numbers = #tpu.dot_dimension_numbers<[1], [0], [0], [1], [0, 0, 1, 1], [], []>} : vector<8x8xf32>, vector<8x128xf32>, vector<8x128xf32> -> vector<8x128xf32>
    %16 = arith.addf %15, %4 : vector<8x128xf32>
    %c3 = arith.constant 3 : index
    %c0_14 = arith.constant 0 : index
    %c0_15 = arith.constant 0 : index
    %17 = vector.load %arg1[%c3, %c0_14, %c0_15] : memref<8x8x8xf32, #tpu.memory_space<vmem>>, vector<1x8x8xf32>
    %18 = vector.shape_cast %17 : vector<1x8x8xf32> to vector<8x8xf32>
    %cst_16 = arith.constant dense<0.000000e+00> : vector<8x128xf32>
    %19 = tpu.matmul %18, %0, %cst_16 {dimension_numbers = #tpu.dot_dimension_numbers<[1], [0], [0], [1], [0, 0, 1, 1], [], []>} : vector<8x8xf32>, vector<8x128xf32>, vector<8x128xf32> -> vector<8x128xf32>
    %20 = arith.addf %19, %4 : vector<8x128xf32>
    %c4 = arith.constant 4 : index
    %c0_17 = arith.constant 0 : index
    %c0_18 = arith.constant 0 : index
    %21 = vector.load %arg1[%c4, %c0_17, %c0_18] : memref<8x8x8xf32, #tpu.memory_space<vmem>>, vector<1x8x8xf32>
    %22 = vector.shape_cast %21 : vector<1x8x8xf32> to vector<8x8xf32>
    %cst_19 = arith.constant dense<0.000000e+00> : vector<8x128xf32>
    %23 = tpu.matmul %22, %0, %cst_19 {dimension_numbers = #tpu.dot_dimension_numbers<[1], [0], [0], [1], [0, 0, 1, 1], [], []>} : vector<8x8xf32>, vector<8x128xf32>, vector<8x128xf32> -> vector<8x128xf32>
    %24 = arith.addf %23, %4 : vector<8x128xf32>
    %c5 = arith.constant 5 : index
    %c0_20 = arith.constant 0 : index
    %c0_21 = arith.constant 0 : index
    %25 = vector.load %arg1[%c5, %c0_20, %c0_21] : memref<8x8x8xf32, #tpu.memory_space<vmem>>, vector<1x8x8xf32>
    %26 = vector.shape_cast %25 : vector<1x8x8xf32> to vector<8x8xf32>
    %cst_22 = arith.constant dense<0.000000e+00> : vector<8x128xf32>
    %27 = tpu.matmul %26, %0, %cst_22 {dimension_numbers = #tpu.dot_dimension_numbers<[1], [0], [0], [1], [0, 0, 1, 1], [], []>} : vector<8x8xf32>, vector<8x128xf32>, vector<8x128xf32> -> vector<8x128xf32>
    %28 = arith.addf %27, %4 : vector<8x128xf32>
    %c6 = arith.constant 6 : index
    %c0_23 = arith.constant 0 : index
    %c0_24 = arith.constant 0 : index
    %29 = vector.load %arg1[%c6, %c0_23, %c0_24] : memref<8x8x8xf32, #tpu.memory_space<vmem>>, vector<1x8x8xf32>
    %30 = vector.shape_cast %29 : vector<1x8x8xf32> to vector<8x8xf32>
    %cst_25 = arith.constant dense<0.000000e+00> : vector<8x128xf32>
    %31 = tpu.matmul %30, %0, %cst_25 {dimension_numbers = #tpu.dot_dimension_numbers<[1], [0], [0], [1], [0, 0, 1, 1], [], []>} : vector<8x8xf32>, vector<8x128xf32>, vector<8x128xf32> -> vector<8x128xf32>
    %32 = arith.addf %31, %4 : vector<8x128xf32>
    %c7 = arith.constant 7 : index
    %c0_26 = arith.constant 0 : index
    %c0_27 = arith.constant 0 : index
    %33 = vector.load %arg1[%c7, %c0_26, %c0_27] : memref<8x8x8xf32, #tpu.memory_space<vmem>>, vector<1x8x8xf32>
    %34 = vector.shape_cast %33 : vector<1x8x8xf32> to vector<8x8xf32>
    %cst_28 = arith.constant dense<0.000000e+00> : vector<8x128xf32>
    %35 = tpu.matmul %34, %0, %cst_28 {dimension_numbers = #tpu.dot_dimension_numbers<[1], [0], [0], [1], [0, 0, 1, 1], [], []>} : vector<8x8xf32>, vector<8x128xf32>, vector<8x128xf32> -> vector<8x128xf32>
    %36 = arith.addf %35, %4 : vector<8x128xf32>
    %cst_29 = arith.constant 0.000000e+00 : f32
    %37 = vector.broadcast %cst_29 : f32 to vector<8x128xf32>
    %cst_30 = arith.constant dense<0.000000e+00> : vector<8x128xf32>
    %38 = tpu.matmul %37, %1, %cst_30 {dimension_numbers = #tpu.dot_dimension_numbers<[1], [0], [0], [1], [0, 0, 1, 1], [], []>} : vector<8x128xf32>, vector<128x128xf32>, vector<8x128xf32> -> vector<8x128xf32>
    %39 = arith.addf %8, %38 : vector<8x128xf32>
    %40 = math.tanh %39 : vector<8x128xf32>
    %cst_31 = arith.constant dense<0.000000e+00> : vector<8x128xf32>
    %41 = tpu.matmul %40, %1, %cst_31 {dimension_numbers = #tpu.dot_dimension_numbers<[1], [0], [0], [1], [0, 0, 1, 1], [], []>} : vector<8x128xf32>, vector<128x128xf32>, vector<8x128xf32> -> vector<8x128xf32>
    %42 = arith.addf %12, %41 : vector<8x128xf32>
    %43 = math.tanh %42 : vector<8x128xf32>
    %cst_32 = arith.constant dense<0.000000e+00> : vector<8x128xf32>
    %44 = tpu.matmul %43, %1, %cst_32 {dimension_numbers = #tpu.dot_dimension_numbers<[1], [0], [0], [1], [0, 0, 1, 1], [], []>} : vector<8x128xf32>, vector<128x128xf32>, vector<8x128xf32> -> vector<8x128xf32>
    %45 = arith.addf %16, %44 : vector<8x128xf32>
    %46 = math.tanh %45 : vector<8x128xf32>
    %cst_33 = arith.constant dense<0.000000e+00> : vector<8x128xf32>
    %47 = tpu.matmul %46, %1, %cst_33 {dimension_numbers = #tpu.dot_dimension_numbers<[1], [0], [0], [1], [0, 0, 1, 1], [], []>} : vector<8x128xf32>, vector<128x128xf32>, vector<8x128xf32> -> vector<8x128xf32>
    %48 = arith.addf %20, %47 : vector<8x128xf32>
    %49 = math.tanh %48 : vector<8x128xf32>
    %cst_34 = arith.constant dense<0.000000e+00> : vector<8x128xf32>
    %50 = tpu.matmul %49, %1, %cst_34 {dimension_numbers = #tpu.dot_dimension_numbers<[1], [0], [0], [1], [0, 0, 1, 1], [], []>} : vector<8x128xf32>, vector<128x128xf32>, vector<8x128xf32> -> vector<8x128xf32>
    %51 = arith.addf %24, %50 : vector<8x128xf32>
    %52 = math.tanh %51 : vector<8x128xf32>
    %cst_35 = arith.constant dense<0.000000e+00> : vector<8x128xf32>
    %53 = tpu.matmul %52, %1, %cst_35 {dimension_numbers = #tpu.dot_dimension_numbers<[1], [0], [0], [1], [0, 0, 1, 1], [], []>} : vector<8x128xf32>, vector<128x128xf32>, vector<8x128xf32> -> vector<8x128xf32>
    %54 = arith.addf %28, %53 : vector<8x128xf32>
    %55 = math.tanh %54 : vector<8x128xf32>
    %cst_36 = arith.constant dense<0.000000e+00> : vector<8x128xf32>
    %56 = tpu.matmul %55, %1, %cst_36 {dimension_numbers = #tpu.dot_dimension_numbers<[1], [0], [0], [1], [0, 0, 1, 1], [], []>} : vector<8x128xf32>, vector<128x128xf32>, vector<8x128xf32> -> vector<8x128xf32>
    %57 = arith.addf %32, %56 : vector<8x128xf32>
    %58 = math.tanh %57 : vector<8x128xf32>
    %cst_37 = arith.constant dense<0.000000e+00> : vector<8x128xf32>
    %59 = tpu.matmul %58, %1, %cst_37 {dimension_numbers = #tpu.dot_dimension_numbers<[1], [0], [0], [1], [0, 0, 1, 1], [], []>} : vector<8x128xf32>, vector<128x128xf32>, vector<8x128xf32> -> vector<8x128xf32>
    %60 = arith.addf %36, %59 : vector<8x128xf32>
    %61 = math.tanh %60 : vector<8x128xf32>
    %c0_38 = arith.constant 0 : index
    %c0_39 = arith.constant 0 : index
    %62 = vector.load %arg5[%c0_38, %c0_39] : memref<128x128xf32, #tpu.memory_space<vmem>>, vector<128x128xf32>
    %cst_40 = arith.constant dense<0.000000e+00> : vector<8x128xf32>
    %63 = tpu.matmul %61, %62, %cst_40 {dimension_numbers = #tpu.dot_dimension_numbers<[1], [0], [0], [1], [0, 0, 1, 1], [], []>} : vector<8x128xf32>, vector<128x128xf32>, vector<8x128xf32> -> vector<8x128xf32>
    %c0_41 = arith.constant 0 : index
    %c0_42 = arith.constant 0 : index
    %64 = vector.load %arg6[%c0_41, %c0_42] : memref<1x128xf32, #tpu.memory_space<vmem>>, vector<1x128xf32>
    %65 = vector.broadcast %64 : vector<1x128xf32> to vector<8x128xf32>
    %66 = arith.addf %63, %65 : vector<8x128xf32>
    %67 = tpu.iota {dimensions = array<i32: 1>} : vector<8x128xi32>
    %c10_i32 = arith.constant 10 : i32
    %68 = vector.broadcast %c10_i32 : i32 to vector<8x128xi32>
    %69 = arith.cmpi slt, %67, %68 : vector<8x128xi32>
    %cst_43 = arith.constant -1.000000e+30 : f32
    %70 = vector.broadcast %cst_43 : f32 to vector<8x128xf32>
    %71 = arith.select %69, %66, %70 : vector<8x128xi1>, vector<8x128xf32>
    %cst_44 = arith.constant dense<0xFF800000> : vector<8xf32>
    %72 = vector.multi_reduction <maximumf>, %71, %cst_44 [1] : vector<8x128xf32> to vector<8xf32>
    %73 = vector.shape_cast %72 : vector<8xf32> to vector<8x1xf32>
    %74 = vector.broadcast %73 : vector<8x1xf32> to vector<8x128xf32>
    %75 = arith.subf %71, %74 : vector<8x128xf32>
    %76 = math.exp %75 : vector<8x128xf32>
    %cst_45 = arith.constant dense<0.000000e+00> : vector<8xf32>
    %77 = vector.multi_reduction <add>, %76, %cst_45 [1] : vector<8x128xf32> to vector<8xf32>
    %78 = vector.shape_cast %77 : vector<8xf32> to vector<8x1xf32>
    %79 = tpu.reciprocal %78 {approx = true} : vector<8x1xf32> -> vector<8x1xf32>
    %80 = arith.mulf %78, %79 : vector<8x1xf32>
    %cst_46 = arith.constant 2.000000e+00 : f32
    %81 = vector.broadcast %cst_46 : f32 to vector<8x1xf32>
    %82 = arith.subf %81, %80 : vector<8x1xf32>
    %83 = arith.mulf %79, %82 : vector<8x1xf32>
    %84 = vector.broadcast %83 : vector<8x1xf32> to vector<8x128xf32>
    %85 = arith.mulf %76, %84 : vector<8x128xf32>
    %c0_47 = arith.constant 0 : index
    %c0_48 = arith.constant 0 : index
    %86 = vector.load %arg7[%c0_47, %c0_48] : memref<8x128xf32, #tpu.memory_space<vmem>>, vector<8x128xf32>
    tpu.vector_store %arg7[%c0_47, %c0_48], %85 {strides = array<i32>} : memref<8x128xf32, #tpu.memory_space<vmem>>, vector<8x128xf32>,
    return
  }
  func.func @transform_0(%arg0: i32) -> (i32, i32, i32) {
    %c0_i32 = arith.constant 0 : i32
    %c0_i32_0 = arith.constant 0 : i32
    %c0_i32_1 = arith.constant 0 : i32
    return %c0_i32, %arg0, %c0_i32_0 : i32, i32, i32
  }
  func.func @transform_1(%arg0: i32) -> (i32, i32) {
    %c0_i32 = arith.constant 0 : i32
    %c0_i32_0 = arith.constant 0 : i32
    %c0_i32_1 = arith.constant 0 : i32
    return %c0_i32, %c0_i32_0 : i32, i32
  }
  func.func @transform_2(%arg0: i32) -> (i32, i32) {
    %c0_i32 = arith.constant 0 : i32
    %c0_i32_0 = arith.constant 0 : i32
    %c0_i32_1 = arith.constant 0 : i32
    return %c0_i32, %c0_i32_0 : i32, i32
  }
  func.func @transform_3(%arg0: i32) -> (i32, i32) {
    %c0_i32 = arith.constant 0 : i32
    %c0_i32_0 = arith.constant 0 : i32
    %c0_i32_1 = arith.constant 0 : i32
    return %c0_i32, %c0_i32_0 : i32, i32
  }
  func.func @transform_4(%arg0: i32) -> (i32, i32) {
    %c0_i32 = arith.constant 0 : i32
    %c0_i32_0 = arith.constant 0 : i32
    %c0_i32_1 = arith.constant 0 : i32
    return %c0_i32, %c0_i32_0 : i32, i32
  }
  func.func @transform_5(%arg0: i32) -> (i32, i32) {
    %c0_i32 = arith.constant 0 : i32
    %c0_i32_0 = arith.constant 0 : i32
    %c0_i32_1 = arith.constant 0 : i32
    return %c0_i32, %c0_i32_0 : i32, i32
  }
  func.func @transform_6(%arg0: i32) -> (i32, i32) {
    %c0_i32 = arith.constant 0 : i32
    %c0_i32_0 = arith.constant 0 : i32
    return %arg0, %c0_i32 : i32, i32
  }
}

</mosaic_0001>

<bundles_post_ra>
// kernel: tpu_custom_call.1
= control target key start
LH: loop header
LB: loop body
LE: loop exit
PB: predicated region body
PF: predicated region fallthrough
CT: control target
= control target key end

     0   :  { %11 = vsyncpa [#allocation3], 0  ;;  %s979_s0 = inlined_call_operand.hbm [shape: f32[8,8,8], index: 0, kind: input, shape index: {}]   ;;  %s980_s1 = inlined_call_operand.hbm [shape: f32[8,128], index: 1, kind: input, shape index: {}]   ;;  %s981_s2 = inlined_call_operand.hbm [shape: f32[128,128], index: 2, kind: input, shape index: {}]   ;;  %s982_s3 = inlined_call_operand.vmem [shape: f32[1,128], index: 3, kind: input, shape index: {}]   ;;  %s983_s4 = inlined_call_operand.hbm [shape: f32[128,128], index: 4, kind: input, shape index: {}]   ;;  %s984_s5 = inlined_call_operand.vmem [shape: f32[1,128], index: 5, kind: input, shape index: {}]   ;;  %s985_s6 = inlined_call_operand.hbm [shape: f32[8,128], index: 6, kind: output, shape index: {}]  }
   0x1   :  { %12 = vsyncpa [#allocation6], 0 }
   0x2   :  { %13 = vsyncpa [#allocation9], 0  ;;  %s33_s23 = sshll.u32 %s980_s1, 4  ;;  %s34_s23 = int_to_ptr.hbm [resolvable:$true] %s33_s23 }
   0x3   :  { %14 = vsyncpa [#allocation4], 0  ;;  %s724_s24 = smov [#allocation5]   ;;  %s19_s28 = sshll.u32 %s979_s0, 4  ;;  %s20_s28 = int_to_ptr.hbm [resolvable:$true] %s19_s28 }
   0x4   :  { %s35_s25 = sshll.u32 %s724_s24, 4  ;;  %s725_s29 = smov [#allocation2]   ;;  %s36_s25 = int_to_ptr.vmem [resolvable:$true] %s35_s25 }
   0x5   :  { %38 = dma.hbm_to_vmem [thread:$0]  %s34_s23, 128, %s36_s25, [#allocation6]  }
   0x6   :  { %s21_s30 = sshll.u32 %s725_s29, 4  ;;  %s726_s7 = smov 128   ;;  %s22_s30 = int_to_ptr.vmem [resolvable:$true] %s21_s30 }
   0x7   :  { %s727_s8 = smov 8   ;;  %s43_s1 = sshll.u32 %s981_s2, 4  ;;  %s44_s1 = int_to_ptr.hbm [resolvable:$true] %s43_s1 }
   0x8   :  { %27 = dma.hbm_to_vmem [thread:$0]  %s20_s28, 1024, %s22_s30, [#allocation3], %s726_s7, %s726_s7, %s727_s8  }
   0x9   :  { %s728_s11 = smov [#allocation7]   ;;  %s58_s0 = sshll.u32 %s983_s4, 4  ;;  %s59_s0 = int_to_ptr.hbm [resolvable:$true] %s58_s0 }
   0xa   :  { %s45_s12 = sshll.u32 %s728_s11, 4  ;;  %s729_s15 = smov [#allocation8]   ;;  %s46_s12 = int_to_ptr.vmem [resolvable:$true] %s45_s12 }
   0xb   :  { %51 = dma.hbm_to_vmem [thread:$0]  %s44_s1, 2048, %s46_s12, [#allocation6], %s726_s7, %s726_s7, %s727_s8  }
   0xc   :  { %s60_s16 = sshll.u32 %s729_s15, 4  ;;  %s61_s16 = int_to_ptr.vmem [resolvable:$true] %s60_s16 }
   0xd   :  { %66 = dma.hbm_to_vmem [thread:$0]  %s59_s0, 2048, %s61_s16, [#allocation9], %s726_s7, %s726_s7, %s727_s8  }
   0xe   :  { %716 = dma.done.wait [#allocation3], 1024  }
   0xf   :  { %717 = vsyncadd [#allocation3], 4294966272 }
  0x10   :  { %718 = dma.done.wait [#allocation6], 2176  }
  0x11   :  { %719 = vsyncadd [#allocation6], 4294965120 }
  0x12   :  { %720 = dma.done.wait [#allocation9], 2048  }
  0x13   :  { %721 = vsyncadd [#allocation9], 4294965248  ;;  %v779_v0 = vld [vmem:[#allocation7 + $0x78] sm:$0xff]  ;;  %v781_v1 = vld [vmem:[#allocation7 + $0x70] sm:$0xff]  ;;  %vm107_vm0 = vcmask 64512   ;;  %v730_v19 = vmov 0.0  }
  0x14   :  { %306 = vmatpush.msra.mxu0 %v779_v0  ;;  %v784_v2 = vld [vmem:[#allocation7 + $0x68] sm:$0xff]  ;;  %v787_v3 = vld [vmem:[#allocation7 + $0x60] sm:$0xff]  ;;  %v789_v4 = vld [vmem:[#allocation5] sm:$0xff]  ;;  %s731_s18 = smov [#allocation10]   ;;  %s546_s21 = sshll.u32 %s985_s6, 4  ;;  %s547_s21 = int_to_ptr.hbm [resolvable:$true] %s546_s21 }
  0x15   :  { %126 = vmatpush.msra.mxu1 %v789_v4  ;;  %v106_v5 = vld [vmem:[#allocation2] sm:$0xff]  ;;  %176 = vmatpush.msra.mxu2 %v789_v4  ;;  %v799_v7 = vld [vmem:[#allocation7 + $0x50] sm:$0xff]  ;;  %v805_v8 = vld [vmem:[#allocation7 + $0x48] sm:$0xff]  ;;  %s544_s19 = sshll.u32 %s731_s18, 4  ;;  %s545_s19 = int_to_ptr.vmem [resolvable:$true] %s544_s19 }
  0x16   :  { %307 = vmatpush.msra.mxu0 %v781_v1  ;;  %v793_v6 = vld [vmem:[#allocation7 + $0x58] sm:$0xff]  ;;  %558 = vmatmul.msk.f32.vlgmr.msra.gmra.mxu1 %vm107_vm0, %v106_v5  ;;  %v132_v9 = vld [vmem:[#allocation2 + $0x8] sm:$0xff]  ;;  %v817_v12 = vld [vmem:[#allocation7 + $0x30] sm:$0xff] }
  0x17   :  { %151 = vmatpush.msrb.mxu1 %v789_v4  ;;  %226 = vmatpush.msrb.mxu2 %v789_v4  ;;  %v809_v10 = vld [vmem:[#allocation7 + $0x40] sm:$0xff]  ;;  %v812_v11 = vld [vmem:[#allocation7 + $0x38] sm:$0xff]  ;;  %v821_v13 = vld [vmem:[#allocation7 + $0x28] sm:$0xff] }
  0x18   :  { %308 = vmatpush.msra.mxu0 %v784_v2  ;;  %201 = vmatpush.msra.mxu3 %v789_v4  ;;  %v825_v14 = vld [vmem:[#allocation7 + $0x20] sm:$0xff]  ;;  %v829_v15 = vld [vmem:[#allocation7 + $0x18] sm:$0xff]  ;;  %v833_v16 = vld [vmem:[#allocation7 + $0x10] sm:$0xff] }
  0x19   :  { %251 = vmatpush.msra.mxu1 %v789_v4  ;;  %v837_v17 = vld [vmem:[#allocation7 + $0x8] sm:$0xff]  ;;  %v841_v18 = vld [vmem:[#allocation7] sm:$0xff]  ;;  %v207_v22 = vld [vmem:[#allocation2 + $0x20] sm:$0xff] }
  0x1a   :  { %309 = vmatpush.msra.mxu0 %v787_v3  ;;  %301 = vmatpush.msrb.mxu3 %v789_v4  ;;  %v232_v20 = vld [vmem:[#allocation2 + $0x28] sm:$0xff]  ;;  %v157_v21 = vld [vmem:[#allocation2 + $0x10] sm:$0xff]  ;;  %v891_v23 = vld [vmem:[%s982_s3] ss:$0 sm:$0xff] }
  0x1b   :  { %560 = vmatmul.msk.f32.vlgmr.msra.gmra.mxu2 %vm107_vm0, %v157_v21  ;;  %v257_v29 = vld [vmem:[#allocation2 + $0x30] sm:$0xff]  ;;  %v182_v30 = vld [vmem:[#allocation2 + $0x18] sm:$0xff]  ;;  %v497_v59 = vld [vmem:[#allocation8 + $0x78] sm:$0xff] }
  0x1c   :  { %310 = vmatpush.msra.mxu0 %v793_v6  ;;  %276 = vmatpush.msra.mxu2 %v789_v4  ;;  %v282_v37 = vld [vmem:[#allocation2 + $0x38] sm:$0xff]  ;;  %v495_v61 = vld [vmem:[#allocation8 + $0x68] sm:$0xff]  ;;  %v494_v62 = vld [vmem:[#allocation8 + $0x60] sm:$0xff] }
  0x1d   :  { %561 = vmatmul.msk.f32.vlgmr.msra.gmra.mxu3 %vm107_vm0, %v182_v30  ;;  %v496_v60 = vld [vmem:[#allocation8 + $0x70] sm:$0xff]  ;;  %v493_v63 = vld [vmem:[#allocation8 + $0x58] sm:$0xff]  ;;  %v487_v5 = vld [vmem:[#allocation8 + $0x28] sm:$0xff] }
  0x1e   :  { %311 = vmatpush.msra.mxu0 %v799_v7  ;;  %559 = vmatmul.msk.f32.vlgmr.msrb.gmra.mxu1 %vm107_vm0, %v132_v9  ;;  %v488_v4 = vld [vmem:[#allocation8 + $0x30] sm:$0xff]  ;;  %v575_v21 = vld [vmem:[%s984_s5] ss:$0 sm:$0xff] }
  0x1f   :  { %328 = vmatpush.msrb.mxu1 %v779_v0  ;;  %372 = vmatpush.msra.mxu3 %v779_v0 }
  0x20   :  { %312 = vmatpush.msra.mxu0 %v805_v8 }
  0x21   :  { %329 = vmatpush.msrb.mxu1 %v781_v1  ;;  %373 = vmatpush.msra.mxu3 %v781_v1 }
  0x22   :  { %313 = vmatpush.msra.mxu0 %v809_v10 }
  0x23   :  { %330 = vmatpush.msrb.mxu1 %v784_v2  ;;  %562 = vmatmul.msk.f32.vlgmr.msrb.gmra.mxu2 %vm107_vm0, %v207_v22 }
  0x24   :  { %314 = vmatpush.msra.mxu0 %v812_v11  ;;  %350 = vmatpush.msrb.mxu2 %v779_v0 }
  0x25   :  { %331 = vmatpush.msrb.mxu1 %v787_v3  ;;  %374 = vmatpush.msra.mxu3 %v784_v2 }
  0x26   :  { %315 = vmatpush.msra.mxu0 %v817_v12  ;;  %563 = vmatmul.msk.f32.vlgmr.msra.gmra.mxu1 %vm107_vm0, %v232_v20 }
  0x27   :  { %332 = vmatpush.msrb.mxu1 %v793_v6  ;;  %351 = vmatpush.msrb.mxu2 %v781_v1 }
  0x28   :  { %316 = vmatpush.msra.mxu0 %v821_v13  ;;  %375 = vmatpush.msra.mxu3 %v787_v3 }
  0x29   :  { %333 = vmatpush.msrb.mxu1 %v799_v7  ;;  %352 = vmatpush.msrb.mxu2 %v784_v2 }
  0x2a   :  { %317 = vmatpush.msra.mxu0 %v825_v14  ;;  %376 = vmatpush.msra.mxu3 %v793_v6 }
  0x2b   :  { %334 = vmatpush.msrb.mxu1 %v805_v8  ;;  %353 = vmatpush.msrb.mxu2 %v787_v3 }
  0x2c   :  { %318 = vmatpush.msra.mxu0 %v829_v15  ;;  %564 = vmatmul.msk.f32.vlgmr.msra.gmra.mxu2 %vm107_vm0, %v257_v29 }
  0x2d   :  { %335 = vmatpush.msrb.mxu1 %v809_v10  ;;  %354 = vmatpush.msrb.mxu2 %v793_v6 }
  0x2e   :  { %319 = vmatpush.msra.mxu0 %v833_v16  ;;  %377 = vmatpush.msra.mxu3 %v799_v7 }
  0x2f   :  { %336 = vmatpush.msrb.mxu1 %v812_v11  ;;  %355 = vmatpush.msrb.mxu2 %v799_v7 }
  0x30   :  { %320 = vmatpush.msra.mxu0 %v837_v17  ;;  %378 = vmatpush.msra.mxu3 %v805_v8 }
  0x31   :  { %337 = vmatpush.msrb.mxu1 %v817_v12  ;;  %356 = vmatpush.msrb.mxu2 %v805_v8 }
  0x32   :  { %321 = vmatpush.msra.mxu0 %v841_v18  ;;  %379 = vmatpush.msra.mxu3 %v809_v10 }
  0x33   :  { %322 = vmatmul.f32.vlgmr.msra.gmra.mxu0 %v730_v19  ;;  %338 = vmatpush.msrb.mxu1 %v821_v13  ;;  %v522_v19 = vlaneseq }
  0x34   :  { %394 = vmatpush.msrb.mxu0 %v779_v0  ;;  %357 = vmatpush.msrb.mxu2 %v809_v10 }
  0x35   :  { %339 = vmatpush.msrb.mxu1 %v825_v14  ;;  %380 = vmatpush.msra.mxu3 %v812_v11  ;;  %v523_v20 = vand.u32 127, %v522_v19 }
  0x36   :  { %395 = vmatpush.msrb.mxu0 %v781_v1  ;;  %358 = vmatpush.msrb.mxu2 %v812_v11 }
  0x37   :  { %340 = vmatpush.msrb.mxu1 %v829_v15  ;;  %381 = vmatpush.msra.mxu3 %v817_v12  ;;  %vm524_vm1 = vcmp.lt.s32.totalorder %v523_v20, 10 }
  0x38   :  { %396 = vmatpush.msrb.mxu0 %v784_v2  ;;  %359 = vmatpush.msrb.mxu2 %v817_v12 }
  0x39   :  { %341 = vmatpush.msrb.mxu1 %v833_v16  ;;  %382 = vmatpush.msra.mxu3 %v821_v13 }
  0x3a   :  { %397 = vmatpush.msrb.mxu0 %v787_v3  ;;  %360 = vmatpush.msrb.mxu2 %v821_v13 }
  0x3b   :  { %342 = vmatpush.msrb.mxu1 %v837_v17  ;;  %383 = vmatpush.msra.mxu3 %v825_v14 }
  0x3c   :  { %398 = vmatpush.msrb.mxu0 %v793_v6  ;;  %361 = vmatpush.msrb.mxu2 %v825_v14 }
  0x3d   :  { %343 = vmatpush.msrb.mxu1 %v841_v18  ;;  %384 = vmatpush.msra.mxu3 %v829_v15 }
  0x3e   :  { %399 = vmatpush.msrb.mxu0 %v799_v7  ;;  %362 = vmatpush.msrb.mxu2 %v829_v15 }
  0x3f   :  { %416 = vmatpush.msra.mxu1 %v779_v0  ;;  %385 = vmatpush.msra.mxu3 %v833_v16 }
  0x40   :  { %400 = vmatpush.msrb.mxu0 %v805_v8  ;;  %363 = vmatpush.msrb.mxu2 %v833_v16 }
  0x41   :  { %417 = vmatpush.msra.mxu1 %v781_v1  ;;  %386 = vmatpush.msra.mxu3 %v837_v17 }
  0x42   :  { %401 = vmatpush.msrb.mxu0 %v809_v10  ;;  %364 = vmatpush.msrb.mxu2 %v837_v17 }
  0x43   :  { %418 = vmatpush.msra.mxu1 %v784_v2  ;;  %387 = vmatpush.msra.mxu3 %v841_v18 }
  0x44   :  { %402 = vmatpush.msrb.mxu0 %v812_v11  ;;  %365 = vmatpush.msrb.mxu2 %v841_v18 }
  0x45   :  { %419 = vmatpush.msra.mxu1 %v787_v3  ;;  %565 = vmatmul.msk.f32.vlgmr.msrb.gmra.mxu3 %vm107_vm0, %v282_v37 }
  0x46   :  { %403 = vmatpush.msrb.mxu0 %v817_v12  ;;  %438 = vmatpush.msra.mxu2 %v779_v0 }
  0x47   :  { %420 = vmatpush.msra.mxu1 %v793_v6  ;;  %460 = vmatpush.msrb.mxu3 %v779_v0  ;;  %v492_v0 = vld [vmem:[#allocation8 + $0x50] sm:$0xff] }
  0x48   :  { %404 = vmatpush.msrb.mxu0 %v821_v13  ;;  %439 = vmatpush.msra.mxu2 %v781_v1 }
  0x49   :  { %421 = vmatpush.msra.mxu1 %v799_v7  ;;  %461 = vmatpush.msrb.mxu3 %v781_v1  ;;  %v491_v1 = vld [vmem:[#allocation8 + $0x48] sm:$0xff] }
  0x4a   :  { %405 = vmatpush.msrb.mxu0 %v825_v14  ;;  %440 = vmatpush.msra.mxu2 %v784_v2 }
  0x4b   :  { %422 = vmatpush.msra.mxu1 %v805_v8  ;;  %462 = vmatpush.msrb.mxu3 %v784_v2  ;;  %v490_v2 = vld [vmem:[#allocation8 + $0x40] sm:$0xff] }
  0x4c   :  { %406 = vmatpush.msrb.mxu0 %v829_v15  ;;  %441 = vmatpush.msra.mxu2 %v787_v3 }
  0x4d   :  { %423 = vmatpush.msra.mxu1 %v809_v10  ;;  %463 = vmatpush.msrb.mxu3 %v787_v3  ;;  %v489_v3 = vld [vmem:[#allocation8 + $0x38] sm:$0xff] }
  0x4e   :  { %407 = vmatpush.msrb.mxu0 %v833_v16  ;;  %442 = vmatpush.msra.mxu2 %v793_v6 }
  0x4f   :  { %424 = vmatpush.msra.mxu1 %v812_v11  ;;  %464 = vmatpush.msrb.mxu3 %v793_v6 }
  0x50   :  { %408 = vmatpush.msrb.mxu0 %v837_v17  ;;  %443 = vmatpush.msra.mxu2 %v799_v7 }
  0x51   :  { %425 = vmatpush.msra.mxu1 %v817_v12  ;;  %465 = vmatpush.msrb.mxu3 %v799_v7 }
  0x52   :  { %409 = vmatpush.msrb.mxu0 %v841_v18  ;;  %444 = vmatpush.msra.mxu2 %v805_v8 }
  0x53   :  { %426 = vmatpush.msra.mxu1 %v821_v13  ;;  %466 = vmatpush.msrb.mxu3 %v805_v8 }
  0x54   :  { %445 = vmatpush.msra.mxu2 %v809_v10  ;;  %502 = vmatpush.msra.mxu0 %v497_v59 }
  0x55   :  { %427 = vmatpush.msra.mxu1 %v825_v14  ;;  %467 = vmatpush.msrb.mxu3 %v809_v10  ;;  %v486_v10 = vld [vmem:[#allocation8 + $0x20] sm:$0xff] }
  0x56   :  { %446 = vmatpush.msra.mxu2 %v812_v11  ;;  %503 = vmatpush.msra.mxu0 %v496_v60 }
  0x57   :  { %428 = vmatpush.msra.mxu1 %v829_v15  ;;  %468 = vmatpush.msrb.mxu3 %v812_v11  ;;  %v485_v11 = vld [vmem:[#allocation8 + $0x18] sm:$0xff] }
  0x58   :  { %447 = vmatpush.msra.mxu2 %v817_v12  ;;  %504 = vmatpush.msra.mxu0 %v495_v61 }
  0x59   :  { %429 = vmatpush.msra.mxu1 %v833_v16  ;;  %469 = vmatpush.msrb.mxu3 %v817_v12  ;;  %v484_v12 = vld [vmem:[#allocation8 + $0x10] sm:$0xff] }
  0x5a   :  { %448 = vmatpush.msra.mxu2 %v821_v13  ;;  %505 = vmatpush.msra.mxu0 %v494_v62 }
  0x5b   :  { %430 = vmatpush.msra.mxu1 %v837_v17  ;;  %470 = vmatpush.msrb.mxu3 %v821_v13  ;;  %v483_v13 = vld [vmem:[#allocation8 + $0x8] sm:$0xff] }
  0x5c   :  { %449 = vmatpush.msra.mxu2 %v825_v14  ;;  %506 = vmatpush.msra.mxu0 %v493_v63 }
  0x5d   :  { %431 = vmatpush.msra.mxu1 %v841_v18  ;;  %471 = vmatpush.msrb.mxu3 %v825_v14  ;;  %v482_v14 = vld [vmem:[#allocation8] sm:$0xff] }
  0x5e   :  { %450 = vmatpush.msra.mxu2 %v829_v15  ;;  %507 = vmatpush.msra.mxu0 %v492_v0 }
  0x5f   :  { %472 = vmatpush.msrb.mxu3 %v829_v15 }
  0x60   :  { %451 = vmatpush.msra.mxu2 %v833_v16  ;;  %508 = vmatpush.msra.mxu0 %v491_v1 }
  0x61   :  { %473 = vmatpush.msrb.mxu3 %v833_v16 }
  0x62   :  { %452 = vmatpush.msra.mxu2 %v837_v17  ;;  %509 = vmatpush.msra.mxu0 %v490_v2 }
  0x63   :  { %474 = vmatpush.msrb.mxu3 %v837_v17 }
  0x64   :  { %453 = vmatpush.msra.mxu2 %v841_v18  ;;  %510 = vmatpush.msra.mxu0 %v489_v3 }
  0x65   :  { %475 = vmatpush.msrb.mxu3 %v841_v18 }
  0x66   :  { %511 = vmatpush.msra.mxu0 %v488_v4 }
  0x68   :  { %512 = vmatpush.msra.mxu0 %v487_v5 }
  0x6a   :  { %513 = vmatpush.msra.mxu0 %v486_v10 }
  0x6c   :  { %514 = vmatpush.msra.mxu0 %v485_v11 }
  0x6e   :  { %515 = vmatpush.msra.mxu0 %v484_v12 }
  0x70   :  { %516 = vmatpush.msra.mxu0 %v483_v13 }
  0x72   :  { %517 = vmatpush.msra.mxu0 %v482_v14 }
  0x93   :  { %v128_v24 = vpop.f32.mrf.mxu1 }
  0x94   :  { %v129_v25 = vadd.f32 %v891_v23, %v128_v24 }
  0x9b   :  { %v153_v31 = vpop.f32.mrf.mxu1 }
  0x9c   :  { %v154_v33 = vadd.f32 %v891_v23, %v153_v31 }
  0x9e   :  { %v178_v38 = vpop.f32.mrf.mxu2 }
  0x9f   :  { %v179_v41 = vadd.f32 %v891_v23, %v178_v38 }
  0xa0   :  { %v203_v45 = vpop.f32.mrf.mxu3 }
  0xa1   :  { %v204_v47 = vadd.f32 %v891_v23, %v203_v45 }
  0xa3   :  { %v929_v32 = vpop.f32.mrf.mxu1 }
  0xa4   :  { %v254_v55 = vadd.f32 %v891_v23, %v929_v32 }
  0xa6   :  { %v228_v39 = vpop.f32.mrf.mxu2 }
  0xa7   :  { %v229_v51 = vadd.f32 %v891_v23, %v228_v39 }
  0xaf   :  { %v278_v40 = vpop.f32.mrf.mxu2 }
  0xb0   :  { %v323_v26 = vpop.f32.mrf.mxu0  ;;  %v279_v6 = vadd.f32 %v891_v23, %v278_v40 }
  0xb1   :  { %v326_v27 = vadd.f32 %v323_v26, %v129_v25 }
  0xb3   :  { %576 = vtanh.f32 %v326_v27 }
  0xb9   :  { %v577_v28 = vpop.eup %576 }
  0xba   :  { %344 = vmatmul.f32.vlgmr.msrb.gmra.mxu1 %v577_v28 }
  0xc8   :  { %v303_v46 = vpop.f32.mrf.mxu3 }
  0xc9   :  { %v304_v15 = vadd.f32 %v891_v23, %v303_v46 }
 0x137   :  { %v345_v34 = vpop.f32.mrf.mxu1 }
 0x138   :  { %v348_v35 = vadd.f32 %v345_v34, %v154_v33 }
 0x13a   :  { %578 = vtanh.f32 %v348_v35 }
 0x140   :  { %v579_v36 = vpop.eup %578 }
 0x141   :  { %366 = vmatmul.f32.vlgmr.msrb.gmra.mxu2 %v579_v36 }
 0x1c4   :  { %v367_v42 = vpop.f32.mrf.mxu2 }
 0x1c5   :  { %v370_v43 = vadd.f32 %v367_v42, %v179_v41 }
 0x1c7   :  { %580 = vtanh.f32 %v370_v43 }
 0x1cd   :  { %v581_v44 = vpop.eup %580 }
 0x1ce   :  { %388 = vmatmul.f32.vlgmr.msra.gmra.mxu3 %v581_v44 }
 0x251   :  { %v389_v48 = vpop.f32.mrf.mxu3 }
 0x252   :  { %v392_v49 = vadd.f32 %v389_v48, %v204_v47 }
 0x254   :  { %582 = vtanh.f32 %v392_v49 }
 0x25a   :  { %v583_v50 = vpop.eup %582 }
 0x25b   :  { %410 = vmatmul.f32.vlgmr.msrb.gmra.mxu0 %v583_v50 }
 0x2d8   :  { %v411_v52 = vpop.f32.mrf.mxu0 }
 0x2d9   :  { %v414_v53 = vadd.f32 %v411_v52, %v229_v51 }
 0x2db   :  { %584 = vtanh.f32 %v414_v53 }
 0x2e1   :  { %v585_v54 = vpop.eup %584 }
 0x2e2   :  { %432 = vmatmul.f32.vlgmr.msra.gmra.mxu1 %v585_v54 }
 0x35f   :  { %v433_v56 = vpop.f32.mrf.mxu1 }
 0x360   :  { %v436_v57 = vadd.f32 %v433_v56, %v254_v55 }
 0x362   :  { %586 = vtanh.f32 %v436_v57 }
 0x368   :  { %v587_v58 = vpop.eup %586 }
 0x369   :  { %454 = vmatmul.f32.vlgmr.msra.gmra.mxu2 %v587_v58 }
 0x3ec   :  { %v455_v7 = vpop.f32.mrf.mxu2 }
 0x3ed   :  { %v458_v8 = vadd.f32 %v455_v7, %v279_v6 }
 0x3ef   :  { %588 = vtanh.f32 %v458_v8 }
 0x3f5   :  { %v589_v9 = vpop.eup %588 }
 0x3f6   :  { %476 = vmatmul.f32.vlgmr.msrb.gmra.mxu3 %v589_v9 }
 0x479   :  { %v477_v16 = vpop.f32.mrf.mxu3 }
 0x47a   :  { %v480_v17 = vadd.f32 %v477_v16, %v304_v15 }
 0x47c   :  { %590 = vtanh.f32 %v480_v17 }
 0x482   :  { %v591_v18 = vpop.eup %590 }
 0x483   :  { %518 = vmatmul.f32.vlgmr.msra.gmra.mxu0 %v591_v18 }
 0x500   :  { %v519_v22 = vpop.f32.mrf.mxu0 }
 0x501   :  { %v520_v24 = vadd.f32 %v575_v21, %v519_v22 }
 0x503   :  { %v525_v25 = vsel %vm524_vm1, %v520_v24, -1e+30 }
 0x504   :  { %526 = vmax.xlane.f32.xlu0 %v525_v25 }
 0x577   :  { %v527_v26 = vpop.xlane.xlu0 %526 }
 0x578   :  { %v528_v27 = vsub.f32 %v525_v25, %v527_v26 }
 0x57a   :  { %v529_v28 = vmul.f32 1.442695, %v528_v27 }
 0x57c   :  { %592 = vpow2.f32 %v529_v28 }
 0x582   :  { %v593_v23 = vpop.eup %592 }
 0x583   :  { %531 = vadd.xlane.f32.xlu0 %v593_v23 }
 0x5f6   :  { %v532_v29 = vpop.xlane.xlu0 %531 }
 0x5f7   :  { %594 = vrcp.f32 %v532_v29 }
 0x5fd   :  { %v595_v30 = vpop.eup %594 }
 0x5fe   :  { %v534_v31 = vmul.f32 %v595_v30, %v532_v29 }
 0x600   :  { %v535_v32 = vsub.f32 2.0, %v534_v31 }
 0x602   :  { %v536_v33 = vmul.f32 %v595_v30, %v535_v32 }
 0x604   :  { %v537_v34 = vmul.f32 %v593_v23, %v536_v33 }
 0x606   :  { %538 = vst [vmem:[#allocation10] sm:$0xff] %v537_v34 }
 0x607   :  { %549 = dma.vmem_to_hbm [thread:$0]  %s545_s19, 128, %s547_s21, [#allocation4]  }
 0x608   :  { %722 = dma.done.wait [#allocation4], 128  }
 0x609   :  { %723 = vsyncadd [#allocation4], 4294967168 }
 0x60a   :  { %554 = vsyncpa [#allocation3], 1 }
 0x60b   :  { %555 = vsyncpa [#allocation6], 1 }
 0x60c   :  { %556 = vsyncpa [#allocation9], 1 }
 0x60d   :  { %557 = vsyncpa [#allocation4], 1 }

</bundles_post_ra>
